<compile_context>
chip_gen: v5e
topology: v5e:2x2
jax: 0.10.0
libtpu: 0.0.40
codegen_flags: <defaults>
</compile_context>

<pallas_src>
import math
from functools import partial

import jax
import jax.numpy as jnp
from jax import lax
from jax.experimental import pallas as pl
from jax.experimental.pallas import tpu as pltpu


def _softplus_f32(x):
    # numerically-stable softplus, evaluated in f32 (matches F.softplus(beta=1))
    x = x.astype(jnp.float32)
    return jnp.maximum(x, 0.0) + jnp.log1p(jnp.exp(-jnp.abs(x)))


def _round_up(x, m):
    return ((x + m - 1) // m) * m


def _positive_linear_kernel(x_ref, w_ref, b_ref, o_ref, *, compute_dtype):
    # softplus in f32 on the EUP (separate VLIW slot -> hidden under MXU/DMA),
    # then cast to the MXU feed dtype.  No cross-step state, so both grid axes
    # are safely "parallel".
    w_pos = _softplus_f32(w_ref[...]).astype(compute_dtype)
    # Contract over the last dim of BOTH operands -> no weight transpose /
    # XLU relayout; lowers straight to the MXU with an f32 accumulator.
    y = lax.dot_general(
        x_ref[...].astype(compute_dtype), w_pos,
        dimension_numbers=(((1,), (1,)), ((), ())),
        preferred_element_type=jnp.float32)
    o_ref[...] = (y + b_ref[...]).astype(o_ref.dtype)   # (tm,tn) + (1,tn) lane broadcast


def positive_linear(x, weight, bias=None):
    """x: (B, in_f), weight: (out_f, in_f), bias: (out_f,) or None -> (B, out_f) in x.dtype."""
    B, in_f = x.shape
    out_f, in_f2 = weight.shape
    assert in_f == in_f2, "weight / input feature mismatch"
    out_dtype = x.dtype
    compute_dtype = x.dtype          # feed the MXU at the input dtype (bf16 x => bf16 MXU)

    # ---- tile / padded-shape selection -------------------------------------
    Kp = _round_up(in_f, 128)                      # lane dim of x / weight tiles (K whole)

    Bp_min = _round_up(B, 8)
    tm = Bp_min if Bp_min <= 512 else 512          # pick tm first, THEN pad B to it

    Np_min = _round_up(out_f, 128)
    tn = Np_min if Np_min <= 512 else 256          # single out tile when it fits, else 256-wide

    x_bytes = jnp.dtype(x.dtype).itemsize
    w_bytes = jnp.dtype(weight.dtype).itemsize
    o_bytes = jnp.dtype(out_dtype).itemsize

    def _footprint(tm_, tn_):
        # double-buffered x / weight / bias / out tiles
        return 2 * (tm_ * Kp * x_bytes + tn_ * Kp * w_bytes + tn_ * 4 + tm_ * tn_ * o_bytes)

    budget = 40 << 20                              # keep well under v7x's 64 MiB physical VMEM
    while _footprint(tm, tn) > budget:
        if tm > 128:
            tm = max(128, _round_up(tm // 2, 8))
        elif tn > 128:
            tn = 256 if tn > 256 else 128
        else:
            break

    Bp = _round_up(B, tm)
    Np = _round_up(out_f, tn)

    # ---- padding: only copy when the shape actually needs it ---------------
    # Padded K columns of x are zero, so softplus(0)=ln2 on padded weight
    # columns contributes nothing; padded rows/cols are sliced off below.
    if Bp != B or Kp != in_f:
        x_p = jnp.zeros((Bp, Kp), x.dtype).at[:B, :in_f].set(x)
    else:
        x_p = x
    if Np != out_f or Kp != in_f:
        w_p = jnp.zeros((Np, Kp), weight.dtype).at[:out_f, :in_f].set(weight)
    else:
        w_p = weight
    if bias is None:
        b_p = jnp.zeros((1, Np), jnp.float32)
    else:
        b_row = bias.astype(jnp.float32).reshape(1, out_f)
        b_p = b_row if Np == out_f else jnp.zeros((1, Np), jnp.float32).at[:, :out_f].set(b_row)

    grid = (Np // tn, Bp // tm)                    # (out tiles, batch tiles); both parallel
    vmem_limit = int(min(max(2 * _footprint(tm, tn), 16 << 20), 48 << 20))   # v7x-safe cap

    out_p = pl.pallas_call(
        partial(_positive_linear_kernel, compute_dtype=compute_dtype),
        out_shape=jax.ShapeDtypeStruct((Bp, Np), out_dtype),
        grid_spec=pltpu.PrefetchScalarGridSpec(
            num_scalar_prefetch=0,
            grid=grid,
            in_specs=[
                pl.BlockSpec((tm, Kp), lambda j, i: (i, 0)),   # x tile
                pl.BlockSpec((tn, Kp), lambda j, i: (j, 0)),   # weight tile (resident over i)
                pl.BlockSpec((1, tn), lambda j, i: (0, j)),    # bias, lane-aligned 2-D
            ],
            out_specs=pl.BlockSpec((tm, tn), lambda j, i: (i, j)),
        ),
        compiler_params=pltpu.CompilerParams(
            dimension_semantics=("parallel", "parallel"),      # megacore-shardable on v7x
            vmem_limit_bytes=vmem_limit),
    )(x_p, w_p, b_p)

    if Bp != B or Np != out_f:
        out_p = out_p[:B, :out_f]
    return out_p


def init_positive_linear_params(key, in_features, out_features, weight_init_offset=-2):
    """Deterministic re-implementation of PositiveLinear.reset_parameters()."""
    kw, kb = jax.random.split(key)
    # kaiming_uniform_(a=sqrt(5)): bound = sqrt(6 / ((1 + a^2) * fan_in)) = sqrt(1/fan_in)
    fan_in = in_features
    w_bound = math.sqrt(1.0 / fan_in)
    weight = jax.random.uniform(kw, (out_features, in_features), jnp.float32,
                                minval=-w_bound, maxval=w_bound)
    weight = weight + weight_init_offset
    b_bound = 1.0 / math.sqrt(fan_in) if fan_in > 0 else 0.0
    bias = jax.random.uniform(kb, (out_features,), jnp.float32,
                              minval=-b_bound, maxval=b_bound)
    return weight, bias


def _reference(x, weight, bias):
    w_pos = jax.nn.softplus(weight)
    return jnp.dot(x, w_pos.T, precision=lax.Precision.HIGHEST) + bias


if __name__ == "__main__":
    key = jax.random.PRNGKey(0)

    # Case 1: small shapes consistent with the module (single grid step).
    k1, k2, k3, k4 = jax.random.split(key, 4)
    B, in_f, out_f = 8, 32, 16
    x = jax.random.normal(k1, (B, in_f), jnp.float32)
    weight, bias = init_positive_linear_params(k2, in_f, out_f)
    y = jax.block_until_ready(positive_linear(x, weight, bias))
    y_ref = _reference(x, weight, bias)
    assert y.shape == (B, out_f)
    assert jnp.allclose(y, y_ref, atol=1e-3, rtol=1e-3), "mismatch vs reference (small)"

    # Case 2: ragged sizes exercising padding + the new tile selection
    # (B=300 -> one 304-row tile; out_f=272 -> one 384-wide lane-dense tile).
    B2, in_f2, out_f2 = 300, 192, 272
    x2 = jax.random.normal(k3, (B2, in_f2), jnp.float32)
    weight2, bias2 = init_positive_linear_params(k4, in_f2, out_f2)
    y2 = jax.block_until_ready(positive_linear(x2, weight2, bias2))
    y2_ref = _reference(x2, weight2, bias2)
    assert y2.shape == (B2, out_f2)
    assert jnp.allclose(y2, y2_ref, atol=1e-3, rtol=1e-3), "mismatch vs reference (ragged)"

    # Case 3: no bias, already-aligned shapes (no-padding fast path).
    x3 = jax.random.normal(k1, (128, 128), jnp.float32)
    w3, _ = init_positive_linear_params(k2, 128, 128)
    y3 = jax.block_until_ready(positive_linear(x3, w3, None))
    y3_ref = jnp.dot(x3, jax.nn.softplus(w3).T, precision=lax.Precision.HIGHEST)
    assert jnp.allclose(y3, y3_ref, atol=1e-3, rtol=1e-3), "mismatch vs reference (no bias)"

    print("KERNEL_OK")
</pallas_src>

<mosaic_0001>
module attributes {stable_mosaic.version = 11 : i64} {
  func.func @_positive_linear_kernel(%arg0: i32, %arg1: i32, %arg2: memref<8x128xf32, #tpu.memory_space<vmem>>, %arg3: memref<128x128xf32, #tpu.memory_space<vmem>>, %arg4: memref<1x128xf32, #tpu.memory_space<vmem>>, %arg5: memref<8x128xf32, #tpu.memory_space<vmem>>) attributes {dimension_semantics = [#tpu.dimension_semantics<parallel>, #tpu.dimension_semantics<parallel>], iteration_bounds = array<i64: 1, 1>, scalar_prefetch = 0 : i64, scratch_operands = 0 : i64, tpu.core_type = #tpu.core_type<tc>, window_params = [{transform_indices = @transform_0, window_bounds = array<i64: 8, 128>}, {transform_indices = @transform_1, window_bounds = array<i64: 128, 128>}, {transform_indices = @transform_2, window_bounds = array<i64: 1, 128>}, {transform_indices = @transform_3, window_bounds = array<i64: 8, 128>}]} {
    %c0 = arith.constant 0 : index
    %c0_0 = arith.constant 0 : index
    %0 = vector.load %arg3[%c0, %c0_0] : memref<128x128xf32, #tpu.memory_space<vmem>>, vector<128x128xf32>
    %cst = arith.constant 0.000000e+00 : f32
    %1 = vector.broadcast %cst : f32 to vector<128x128xf32>
    %2 = arith.maximumf %0, %1 : vector<128x128xf32>
    %3 = math.absf %0 : vector<128x128xf32>
    %cst_1 = arith.constant 0.000000e+00 : f32
    %4 = vector.broadcast %cst_1 : f32 to vector<128x128xf32>
    %5 = arith.subf %4, %3 : vector<128x128xf32>
    %6 = math.exp %5 : vector<128x128xf32>
    %7 = math.log1p %6 : vector<128x128xf32>
    %8 = arith.addf %2, %7 : vector<128x128xf32>
    %c0_2 = arith.constant 0 : index
    %c0_3 = arith.constant 0 : index
    %9 = vector.load %arg2[%c0_2, %c0_3] : memref<8x128xf32, #tpu.memory_space<vmem>>, vector<8x128xf32>
    %cst_4 = arith.constant dense<0.000000e+00> : vector<8x128xf32>
    %10 = tpu.matmul %9, %8, %cst_4 {dimension_numbers = #tpu.dot_dimension_numbers<[1], [1], [0], [0], [0, 0, 1, 0], [], []>} : vector<8x128xf32>, vector<128x128xf32>, vector<8x128xf32> -> vector<8x128xf32>
    %c0_5 = arith.constant 0 : index
    %c0_6 = arith.constant 0 : index
    %11 = vector.load %arg4[%c0_5, %c0_6] : memref<1x128xf32, #tpu.memory_space<vmem>>, vector<1x128xf32>
    %12 = vector.broadcast %11 : vector<1x128xf32> to vector<8x128xf32>
    %13 = arith.addf %10, %12 : vector<8x128xf32>
    %c0_7 = arith.constant 0 : index
    %c0_8 = arith.constant 0 : index
    %14 = vector.load %arg5[%c0_7, %c0_8] : memref<8x128xf32, #tpu.memory_space<vmem>>, vector<8x128xf32>
    tpu.vector_store %arg5[%c0_7, %c0_8], %13 {strides = array<i32>} : memref<8x128xf32, #tpu.memory_space<vmem>>, vector<8x128xf32>,
    return
  }
  func.func @transform_0(%arg0: i32, %arg1: i32) -> (i32, i32) {
    %c0_i32 = arith.constant 0 : i32
    %c0_i32_0 = arith.constant 0 : i32
    return %arg1, %c0_i32 : i32, i32
  }
  func.func @transform_1(%arg0: i32, %arg1: i32) -> (i32, i32) {
    %c0_i32 = arith.constant 0 : i32
    %c0_i32_0 = arith.constant 0 : i32
    return %arg0, %c0_i32 : i32, i32
  }
  func.func @transform_2(%arg0: i32, %arg1: i32) -> (i32, i32) {
    %c0_i32 = arith.constant 0 : i32
    %c0_i32_0 = arith.constant 0 : i32
    return %c0_i32, %arg0 : i32, i32
  }
  func.func @transform_3(%arg0: i32, %arg1: i32) -> (i32, i32) {
    %c0_i32 = arith.constant 0 : i32
    return %arg1, %arg0 : i32, i32
  }
}

</mosaic_0001>

<bundles_post_ra>
// kernel: tpu_custom_call.1
= control target key start
LH: loop header
LB: loop body
LE: loop exit
PB: predicated region body
PF: predicated region fallthrough
CT: control target
= control target key end

     0   :  { %8 = vsyncpa [#allocation3], 0  ;;  %s714_s0 = inlined_call_operand.hbm [shape: f32[8,128], index: 0, kind: input, shape index: {}]   ;;  %s715_s1 = inlined_call_operand.hbm [shape: f32[128,128], index: 1, kind: input, shape index: {}]   ;;  %s716_s2 = inlined_call_operand.vmem [shape: f32[1,128], index: 2, kind: input, shape index: {}]   ;;  %s717_s3 = inlined_call_operand.hbm [shape: f32[8,128], index: 3, kind: output, shape index: {}]  }
   0x1   :  { %9 = vsyncpa [#allocation6], 0 }
   0x2   :  { %10 = vsyncpa [#allocation4], 0  ;;  %s16_s14 = sshll.u32 %s714_s0, 4  ;;  %s493_s15 = smov [#allocation2]   ;;  %s17_s14 = int_to_ptr.hbm [resolvable:$true] %s16_s14 }
   0x3   :  { %s18_s16 = sshll.u32 %s493_s15, 4  ;;  %s26_s19 = sshll.u32 %s715_s1, 4  ;;  %s19_s16 = int_to_ptr.vmem [resolvable:$true] %s18_s16  ;;  %s27_s19 = int_to_ptr.hbm [resolvable:$true] %s26_s19 }
   0x4   :  { %21 = dma.hbm_to_vmem [thread:$0]  %s17_s14, 128, %s19_s16, [#allocation3]  }
   0x5   :  { %s494_s20 = smov [#allocation5]   ;;  %s495_s22 = smov 128  }
   0x6   :  { %s28_s21 = sshll.u32 %s494_s20, 4  ;;  %s496_s23 = smov 8   ;;  %s29_s21 = int_to_ptr.vmem [resolvable:$true] %s28_s21 }
   0x7   :  { %34 = dma.hbm_to_vmem [thread:$0]  %s27_s19, 2048, %s29_s21, [#allocation6], %s495_s22, %s495_s22, %s496_s23  }
   0x8   :  { %487 = dma.done.wait [#allocation3], 128  }
   0x9   :  { %488 = vsyncadd [#allocation3], 4294967168 }
   0xa   :  { %489 = dma.done.wait [#allocation6], 2048  }
   0xb   :  { %490 = vsyncadd [#allocation6], 4294965248  ;;  %v524_v0 = vld [vmem:[#allocation5 + $0x78] sm:$0xff]  ;;  %v526_v1 = vld [vmem:[#allocation5 + $0x70] sm:$0xff]  ;;  %s497_s24 = smov [#allocation7]   ;;  %s334_s28 = sshll.u32 %s717_s3, 4  ;;  %s335_s28 = int_to_ptr.hbm [resolvable:$true] %s334_s28 }
   0xc   :  { %v528_v2 = vld [vmem:[#allocation5 + $0x68] sm:$0xff]  ;;  %v92_v3 = vand.u32 2147483647, %v524_v0  ;;  %v91_v4 = vand.u32 2147483647, %v526_v1  ;;  %v533_v6 = vld [vmem:[#allocation5 + $0x60] sm:$0xff] }
   0xd   :  { %v90_v5 = vand.u32 2147483647, %v528_v2  ;;  %v535_v7 = vld [vmem:[#allocation5 + $0x58] sm:$0xff]  ;;  %v537_v8 = vld [vmem:[#allocation5 + $0x50] sm:$0xff]  ;;  %v89_v11 = vand.u32 2147483647, %v533_v6 }
   0xe   :  { %v108_v9 = vsub.f32 0.0, %v92_v3  ;;  %v107_v10 = vsub.f32 0.0, %v91_v4  ;;  %v88_v12 = vand.u32 2147483647, %v535_v7  ;;  %v87_v14 = vand.u32 2147483647, %v537_v8 }
   0xf   :  { %v106_v13 = vsub.f32 0.0, %v90_v5  ;;  %v542_v15 = vld [vmem:[#allocation5 + $0x48] sm:$0xff]  ;;  %v105_v18 = vsub.f32 0.0, %v89_v11  ;;  %v544_v22 = vld [vmem:[#allocation5 + $0x40] sm:$0xff]  ;;  %v548_v27 = vld [vmem:[#allocation5 + $0x38] sm:$0xff]  ;;  %v76_v54 = vmax.f32 %v524_v0, 0.0 }
  0x10   :  { %v139_v16 = vmul.f32 1.442695, %v108_v9  ;;  %v137_v17 = vmul.f32 1.442695, %v107_v10  ;;  %v104_v19 = vsub.f32 0.0, %v88_v12  ;;  %v103_v21 = vsub.f32 0.0, %v87_v14 }
  0x11   :  { %v135_v20 = vmul.f32 1.442695, %v106_v13  ;;  %v133_v23 = vmul.f32 1.442695, %v105_v18  ;;  %v86_v25 = vand.u32 2147483647, %v542_v15 }
  0x12   :  { %351 = vpow2.f32 %v139_v16  ;;  %v131_v24 = vmul.f32 1.442695, %v104_v19  ;;  %v85_v26 = vand.u32 2147483647, %v544_v22  ;;  %v129_v28 = vmul.f32 1.442695, %v103_v21 }
  0x13   :  { %353 = vpow2.f32 %v137_v17  ;;  %v102_v29 = vsub.f32 0.0, %v86_v25  ;;  %v84_v31 = vand.u32 2147483647, %v548_v27  ;;  %v551_v32 = vld [vmem:[#allocation5 + $0x30] sm:$0xff]  ;;  %v75_v58 = vmax.f32 %v526_v1, 0.0  ;;  %v575_v14 = vld [vmem:[#allocation5 + $0x28] sm:$0xff] }
  0x14   :  { %355 = vpow2.f32 %v135_v20  ;;  %v101_v36 = vsub.f32 0.0, %v85_v26  ;;  %v83_v43 = vand.u32 2147483647, %v551_v32  ;;  %v74_v26 = vmax.f32 %v528_v2, 0.0  ;;  %v643_v25 = vld [vmem:[#allocation5] sm:$0xff]  ;;  %s332_s25 = sshll.u32 %s497_s24, 4  ;;  %s333_s25 = int_to_ptr.vmem [resolvable:$true] %s332_s25 }
  0x15   :  { %357 = vpow2.f32 %v133_v23  ;;  %v127_v40 = vmul.f32 1.442695, %v102_v29  ;;  %v100_v47 = vsub.f32 0.0, %v84_v31  ;;  %v73_v2 = vmax.f32 %v533_v6, 0.0 }
  0x16   :  { %359 = vpow2.f32 %v131_v24  ;;  %v125_v53 = vmul.f32 1.442695, %v101_v36  ;;  %v99_v60 = vsub.f32 0.0, %v83_v43 }
  0x17   :  { %361 = vpow2.f32 %v129_v28  ;;  %v123_v4 = vmul.f32 1.442695, %v100_v47 }
  0x18   :  { %v352_v30 = vpop.eup %351  ;;  %v121_v43 = vmul.f32 1.442695, %v99_v60  ;;  %v624_v60 = vld [vmem:[#allocation5 + $0x18] sm:$0xff] }
  0x19   :  { %v354_v33 = vpop.eup %353  ;;  %v276_v34 = vadd.f32 1.0, %v352_v30  ;;  %v279_v35 = vmul.f32 -0.5, %v352_v30  ;;  %v282_v48 = vand.u32 2147483647, %v352_v30 }
  0x1a   :  { %v356_v37 = vpop.eup %355  ;;  %v267_v38 = vadd.f32 1.0, %v354_v33  ;;  %v270_v39 = vmul.f32 -0.5, %v354_v33  ;;  %v273_v51 = vand.u32 2147483647, %v354_v33 }
  0x1b   :  { %v553_v41 = vpop.eup %357  ;;  %363 = vlog2.f32 %v276_v34  ;;  %v258_v42 = vadd.f32 1.0, %v356_v37  ;;  %v280_v45 = vadd.f32 1.0, %v279_v35  ;;  %v261_v46 = vmul.f32 -0.5, %v356_v37  ;;  %v593_v35 = vld [vmem:[#allocation5 + $0x20] sm:$0xff] }
  0x1c   :  { %v556_v44 = vpop.eup %359  ;;  %365 = vlog2.f32 %v267_v38  ;;  %v271_v49 = vadd.f32 1.0, %v270_v39  ;;  %v249_v50 = vadd.f32 1.0, %v553_v41  ;;  %v252_v52 = vmul.f32 -0.5, %v553_v41 }
  0x1d   :  { %367 = vlog2.f32 %v258_v42  ;;  %v240_v55 = vadd.f32 1.0, %v556_v44  ;;  %v562_v56 = vpop.eup %361  ;;  %v281_v57 = vmul.f32 %v352_v30, %v280_v45  ;;  %v262_v59 = vadd.f32 1.0, %v261_v46 }
  0x1e   :  { %369 = vpow2.f32 %v127_v40  ;;  %vm565_vm0 = vcmp.lt.f32.partialorder %v282_v48, 0.0004427343  ;;  %v272_v63 = vmul.f32 %v354_v33, %v271_v49  ;;  %v264_v3 = vand.u32 2147483647, %v356_v37 }
  0x1f   :  { %371 = vlog2.f32 %v249_v50  ;;  %vm569_vm1 = vcmp.lt.f32.partialorder %v273_v51, 0.0004427343  ;;  %v253_v10 = vadd.f32 1.0, %v252_v52  ;;  %v255_v12 = vand.u32 2147483647, %v553_v41 }
  0x20   :  { %373 = vpow2.f32 %v125_v53  ;;  %v231_v13 = vadd.f32 1.0, %v562_v56  ;;  %v263_v19 = vmul.f32 %v356_v37, %v262_v59  ;;  %v243_v20 = vmul.f32 -0.5, %v556_v44 }
  0x21   :  { %v364_v61 = vpop.eup %363  ;;  %375 = vlog2.f32 %v240_v55  ;;  %vm584_vm2 = vcmp.lt.f32.partialorder %v264_v3, 0.0004427343  ;;  %v254_v28 = vmul.f32 %v553_v41, %v253_v10  ;;  %v234_v29 = vmul.f32 -0.5, %v562_v56 }
  0x22   :  { %v366_v5 = vpop.eup %365  ;;  %v278_v0 = vmul.f32 0.6931472, %v364_v61  ;;  %377 = vpow2.f32 %v123_v4  ;;  %v82_v30 = vand.u32 2147483647, %v575_v14  ;;  %vm600_vm3 = vcmp.lt.f32.partialorder %v255_v12, 0.0004427343 }
  0x23   :  { %v368_v11 = vpop.eup %367  ;;  %v269_v1 = vmul.f32 0.6931472, %v366_v5  ;;  %379 = vlog2.f32 %v231_v13  ;;  %v244_v39 = vadd.f32 1.0, %v243_v20  ;;  %v246_v41 = vand.u32 2147483647, %v556_v44  ;;  %v626_v61 = vld [vmem:[#allocation5 + $0x10] sm:$0xff] }
  0x24   :  { %v577_v16 = vpop.eup %369  ;;  %v284_v17 = vsel %vm565_vm0, %v281_v57, %v278_v0  ;;  %v260_v18 = vmul.f32 0.6931472, %v368_v11  ;;  %v237_v42 = vand.u32 2147483647, %v562_v56  ;;  %v235_v45 = vadd.f32 1.0, %v234_v29  ;;  %v631_v5 = vld [vmem:[#allocation5 + $0x8] sm:$0xff] }
  0x25   :  { %v372_v21 = vpop.eup %371  ;;  %v300_v23 = vadd.f32 %v284_v17, %v76_v54  ;;  %v275_v24 = vsel %vm569_vm1, %v272_v63, %v269_v1  ;;  %v222_v34 = vadd.f32 1.0, %v577_v16  ;;  %v225_v46 = vmul.f32 -0.5, %v577_v16 }
  0x26   :  { %v299_v31 = vadd.f32 %v275_v24, %v75_v58  ;;  %v251_v33 = vmul.f32 0.6931472, %v372_v21  ;;  %v595_v36 = vpop.eup %373  ;;  %v266_v37 = vsel %vm584_vm2, %v263_v19, %v260_v18  ;;  %v98_v47 = vsub.f32 0.0, %v82_v30 }
  0x27   :  { %306 = vmatpush.xpose.msra.mxu0 %v300_v23  ;;  %v376_v40 = vpop.eup %375  ;;  %v81_v48 = vand.u32 2147483647, %v593_v35  ;;  %v298_v6 = vadd.f32 %v266_v37, %v74_v26  ;;  %381 = vlog2.f32 %v222_v34  ;;  %v213_v51 = vadd.f32 1.0, %v595_v36 }
  0x28   :  { %v608_v49 = vpop.eup %377  ;;  %v257_v50 = vsel %vm600_vm3, %v254_v28, %v251_v33  ;;  %v72_v52 = vmax.f32 %v535_v7, 0.0  ;;  %v242_v53 = vmul.f32 0.6931472, %v376_v40  ;;  %v245_v54 = vmul.f32 %v556_v44, %v244_v39 }
  0x29   :  { %v71_v55 = vmax.f32 %v537_v8, 0.0  ;;  %v380_v57 = vpop.eup %379  ;;  %vm616_vm4 = vcmp.lt.f32.partialorder %v246_v41, 0.0004427343  ;;  %vm620_vm5 = vcmp.lt.f32.partialorder %v237_v42, 0.0004427343  ;;  %383 = vpow2.f32 %v121_v43 }
  0x2a   :  { %v297_v7 = vadd.f32 %v257_v50, %v73_v2  ;;  %v236_v62 = vmul.f32 %v562_v56, %v235_v45  ;;  %v226_v44 = vadd.f32 1.0, %v225_v46  ;;  %v204_v8 = vadd.f32 1.0, %v608_v49 }
  0x2b   :  { %307 = vmatpush.xpose.msra.mxu0 %v299_v31  ;;  %385 = vlog2.f32 %v213_v51  ;;  %v216_v63 = vmul.f32 -0.5, %v595_v36  ;;  %v119_v3 = vmul.f32 1.442695, %v98_v47  ;;  %v97_v4 = vsub.f32 0.0, %v81_v48 }
  0x2c   :  { %v248_v0 = vsel %vm616_vm4, %v245_v54, %v242_v53  ;;  %v233_v9 = vmul.f32 0.6931472, %v380_v57  ;;  %v80_v10 = vand.u32 2147483647, %v624_v60  ;;  %v79_v11 = vand.u32 2147483647, %v626_v61 }
  0x2d   :  { %v382_v56 = vpop.eup %381  ;;  %v70_v1 = vmax.f32 %v542_v15, 0.0  ;;  %v228_v12 = vand.u32 2147483647, %v577_v16  ;;  %387 = vpow2.f32 %v119_v3  ;;  %v117_v13 = vmul.f32 1.442695, %v97_v4 }
  0x2e   :  { %389 = vlog2.f32 %v204_v8  ;;  %v96_v17 = vsub.f32 0.0, %v80_v10  ;;  %v95_v18 = vsub.f32 0.0, %v79_v11  ;;  %v78_v19 = vand.u32 2147483647, %v631_v5 }
  0x2f   :  { %308 = vmatpush.xpose.msra.mxu0 %v298_v6  ;;  %v640_v20 = vpop.eup %383  ;;  %v296_v21 = vadd.f32 %v248_v0, %v72_v52  ;;  %v217_v23 = vadd.f32 1.0, %v216_v63  ;;  %v207_v24 = vmul.f32 -0.5, %v608_v49  ;;  %391 = vpow2.f32 %v117_v13  ;;  %v301_v13 = vld [vmem:[#allocation2] sm:$0xff] }
  0x30   :  { %v239_v15 = vsel %vm620_vm5, %v236_v62, %v233_v9  ;;  %v224_v26 = vmul.f32 0.6931472, %v382_v56  ;;  %v227_v28 = vmul.f32 %v577_v16, %v226_v44  ;;  %v195_v29 = vadd.f32 1.0, %v640_v20 }
  0x31   :  { %v386_v30 = vpop.eup %385  ;;  %vm649_vm6 = vcmp.lt.f32.partialorder %v228_v12, 0.0004427343  ;;  %v219_v33 = vand.u32 2147483647, %v595_v36  ;;  %v115_v34 = vmul.f32 1.442695, %v96_v17  ;;  %v295_v40 = vadd.f32 %v239_v15, %v71_v55 }
  0x32   :  { %393 = vlog2.f32 %v195_v29  ;;  %v113_v37 = vmul.f32 1.442695, %v95_v18  ;;  %v94_v2 = vsub.f32 0.0, %v78_v19  ;;  %v77_v38 = vand.u32 2147483647, %v643_v25 }
  0x33   :  { %309 = vmatpush.xpose.msra.mxu0 %v297_v7  ;;  %v388_v39 = vpop.eup %387  ;;  %v218_v16 = vmul.f32 %v595_v36, %v217_v23  ;;  %v208_v41 = vadd.f32 1.0, %v207_v24  ;;  %395 = vpow2.f32 %v115_v34  ;;  %v230_v43 = vsel %vm649_vm6, %v227_v28, %v224_v26 }
  0x34   :  { %v390_v42 = vpop.eup %389  ;;  %v215_v45 = vmul.f32 0.6931472, %v386_v30  ;;  %v198_v46 = vmul.f32 -0.5, %v640_v20  ;;  %v186_v47 = vadd.f32 1.0, %v388_v39  ;;  %vm661_vm7 = vcmp.lt.f32.partialorder %v219_v33, 0.0004427343 }
  0x35   :  { %v659_v48 = vpop.eup %391  ;;  %v210_v50 = vand.u32 2147483647, %v608_v49  ;;  %v69_v36 = vmax.f32 %v544_v22, 0.0  ;;  %397 = vpow2.f32 %v113_v37  ;;  %v111_v51 = vmul.f32 1.442695, %v94_v2 }
  0x36   :  { %v93_v52 = vsub.f32 0.0, %v77_v38  ;;  %v294_v53 = vadd.f32 %v230_v43, %v70_v1  ;;  %v209_v54 = vmul.f32 %v608_v49, %v208_v41  ;;  %399 = vlog2.f32 %v186_v47 }
  0x37   :  { %310 = vmatpush.xpose.msra.mxu0 %v296_v21  ;;  %v177_v55 = vadd.f32 1.0, %v659_v48  ;;  %v221_v58 = vsel %vm661_vm7, %v218_v16, %v215_v45  ;;  %v206_v59 = vmul.f32 0.6931472, %v390_v42  ;;  %v199_v7 = vadd.f32 1.0, %v198_v46 }
  0x38   :  { %v394_v57 = vpop.eup %393  ;;  %v189_v62 = vmul.f32 -0.5, %v388_v39  ;;  %vm671_vm8 = vcmp.lt.f32.partialorder %v210_v50, 0.0004427343  ;;  %v201_v8 = vand.u32 2147483647, %v640_v20  ;;  %v68_v63 = vmax.f32 %v548_v27, 0.0 }
  0x39   :  { %v396_v44 = vpop.eup %395  ;;  %401 = vpow2.f32 %v111_v51  ;;  %v109_v49 = vmul.f32 1.442695, %v93_v52  ;;  %v293_v3 = vadd.f32 %v221_v58, %v69_v36  ;;  %v180_v4 = vmul.f32 -0.5, %v659_v48 }
  0x3a   :  { %403 = vlog2.f32 %v177_v55  ;;  %v168_v0 = vadd.f32 1.0, %v396_v44  ;;  %v212_v10 = vsel %vm671_vm8, %v209_v54, %v206_v59  ;;  %v197_v11 = vmul.f32 0.6931472, %v394_v57 }
  0x3b   :  { %311 = vmatpush.xpose.msra.mxu0 %v295_v40  ;;  %v398_v9 = vpop.eup %397  ;;  %v200_v56 = vmul.f32 %v640_v20, %v199_v7  ;;  %v190_v1 = vadd.f32 1.0, %v189_v62  ;;  %vm681_vm9 = vcmp.lt.f32.partialorder %v201_v8, 0.0004427343  ;;  %v192_v27 = vand.u32 2147483647, %v388_v39 }
  0x3c   :  { %v400_v12 = vpop.eup %399  ;;  %v67_v17 = vmax.f32 %v551_v32, 0.0  ;;  %405 = vpow2.f32 %v109_v49  ;;  %v292_v18 = vadd.f32 %v212_v10, %v68_v63  ;;  %v181_v19 = vadd.f32 1.0, %v180_v4 }
  0x3d   :  { %407 = vlog2.f32 %v168_v0  ;;  %v159_v21 = vadd.f32 1.0, %v398_v9  ;;  %v203_v24 = vsel %vm681_vm9, %v200_v56, %v197_v11  ;;  %v188_v20 = vmul.f32 0.6931472, %v400_v12 }
  0x3e   :  { %v191_v15 = vmul.f32 %v388_v39, %v190_v1  ;;  %v171_v26 = vmul.f32 -0.5, %v396_v44  ;;  %vm688_vm10 = vcmp.lt.f32.partialorder %v192_v27, 0.0004427343  ;;  %v183_v32 = vand.u32 2147483647, %v659_v48 }
  0x3f   :  { %312 = vmatpush.xpose.msra.mxu0 %v294_v53  ;;  %v402_v23 = vpop.eup %401  ;;  %v66_v30 = vmax.f32 %v575_v14, 0.0  ;;  %v291_v31 = vadd.f32 %v203_v24, %v67_v17  ;;  %v182_v33 = vmul.f32 %v659_v48, %v181_v19  ;;  %409 = vlog2.f32 %v159_v21  ;;  %v350_v27 = vld [vmem:[%s716_s2] ss:$0 sm:$0xff] }
  0x40   :  { %v404_v28 = vpop.eup %403  ;;  %v150_v34 = vadd.f32 1.0, %v402_v23  ;;  %v194_v2 = vsel %vm688_vm10, %v191_v15, %v188_v20  ;;  %v172_v39 = vadd.f32 1.0, %v171_v26  ;;  %v162_v40 = vmul.f32 -0.5, %v398_v9 }
  0x41   :  { %v179_v38 = vmul.f32 0.6931472, %v404_v28  ;;  %vm697_vm11 = vcmp.lt.f32.partialorder %v183_v32, 0.0004427343  ;;  %v174_v42 = vand.u32 2147483647, %v396_v44  ;;  %v290_v43 = vadd.f32 %v194_v2, %v66_v30 }
  0x42   :  { %v406_v37 = vpop.eup %405  ;;  %v65_v14 = vmax.f32 %v593_v35, 0.0  ;;  %411 = vlog2.f32 %v150_v34  ;;  %v153_v45 = vmul.f32 -0.5, %v402_v23  ;;  %v173_v6 = vmul.f32 %v396_v44, %v172_v39 }
  0x43   :  { %313 = vmatpush.xpose.msra.mxu0 %v293_v3  ;;  %v408_v16 = vpop.eup %407  ;;  %v141_v46 = vadd.f32 1.0, %v406_v37  ;;  %v185_v47 = vsel %vm697_vm11, %v182_v33, %v179_v38  ;;  %v163_v50 = vadd.f32 1.0, %v162_v40  ;;  %vm175_vm12 = vcmp.lt.f32.partialorder %v174_v42, 0.0004427343 }
  0x44   :  { %v170_v48 = vmul.f32 0.6931472, %v408_v16  ;;  %v165_v51 = vand.u32 2147483647, %v398_v9  ;;  %v289_v52 = vadd.f32 %v185_v47, %v65_v14  ;;  %v64_v53 = vmax.f32 %v624_v60, 0.0 }
  0x45   :  { %v410_v36 = vpop.eup %409  ;;  %v154_v54 = vadd.f32 1.0, %v153_v45  ;;  %413 = vlog2.f32 %v141_v46  ;;  %v164_v57 = vmul.f32 %v398_v9, %v163_v50  ;;  %v144_v58 = vmul.f32 -0.5, %v406_v37 }
  0x46   :  { %v176_v35 = vsel %vm175_vm12, %v173_v6, %v170_v48  ;;  %v161_v55 = vmul.f32 0.6931472, %v410_v36  ;;  %vm166_vm13 = vcmp.lt.f32.partialorder %v165_v51, 0.0004427343  ;;  %v156_v7 = vand.u32 2147483647, %v402_v23 }
  0x47   :  { %314 = vmatpush.xpose.msra.mxu0 %v292_v18  ;;  %v288_v62 = vadd.f32 %v176_v35, %v64_v53  ;;  %v63_v44 = vmax.f32 %v626_v61, 0.0  ;;  %v155_v63 = vmul.f32 %v402_v23, %v154_v54  ;;  %v145_v49 = vadd.f32 1.0, %v144_v58 }
  0x48   :  { %v412_v59 = vpop.eup %411  ;;  %v167_v22 = vsel %vm166_vm13, %v164_v57, %v161_v55  ;;  %vm157_vm14 = vcmp.lt.f32.partialorder %v156_v7, 0.0004427343  ;;  %v147_v60 = vand.u32 2147483647, %v406_v37  ;;  %v62_v0 = vmax.f32 %v631_v5, 0.0 }
  0x49   :  { %v152_v8 = vmul.f32 0.6931472, %v412_v59  ;;  %v287_v4 = vadd.f32 %v167_v22, %v63_v44  ;;  %v146_v11 = vmul.f32 %v406_v37, %v145_v49  ;;  %v61_v1 = vmax.f32 %v643_v25, 0.0 }
  0x4a   :  { %vm148_vm15 = vcmp.lt.f32.partialorder %v147_v60, 0.0004427343 }
  0x4b   :  { %315 = vmatpush.xpose.msra.mxu0 %v291_v31  ;;  %v414_v3 = vpop.eup %413  ;;  %v158_v9 = vsel %vm157_vm14, %v155_v63, %v152_v8 }
  0x4c   :  { %v143_v10 = vmul.f32 0.6931472, %v414_v3  ;;  %v286_v56 = vadd.f32 %v158_v9, %v62_v0 }
  0x4e   :  { %v149_v61 = vsel %vm148_vm15, %v146_v11, %v143_v10 }
  0x4f   :  { %316 = vmatpush.xpose.msra.mxu0 %v290_v43  ;;  %v285_v12 = vadd.f32 %v149_v61, %v61_v1 }
  0x53   :  { %317 = vmatpush.xpose.msra.mxu0 %v289_v52 }
  0x57   :  { %318 = vmatpush.xpose.msra.mxu0 %v288_v62 }
  0x5b   :  { %319 = vmatpush.xpose.msra.mxu0 %v287_v4 }
  0x5f   :  { %320 = vmatpush.xpose.msra.mxu0 %v286_v56 }
  0x63   :  { %321 = vmatpush.xpose.msra.mxu0 %v285_v12 }
  0x66   :  { %322 = vmatmul.f32.vlgmr.msra.gmra.mxu0 %v301_v13 }
  0xe3   :  { %v323_v5 = vpop.f32.mrf.mxu0 }
  0xe4   :  { %v324_v17 = vadd.f32 %v350_v27, %v323_v5 }
  0xe6   :  { %326 = vst [vmem:[#allocation7] sm:$0xff] %v324_v17 }
  0xe7   :  { %337 = dma.vmem_to_hbm [thread:$0]  %s333_s25, 128, %s335_s28, [#allocation4]  }
  0xe8   :  { %491 = dma.done.wait [#allocation4], 128  }
  0xe9   :  { %492 = vsyncadd [#allocation4], 4294967168 }
  0xea   :  { %342 = vsyncpa [#allocation3], 1 }
  0xeb   :  { %343 = vsyncpa [#allocation6], 1 }
  0xec   :  { %344 = vsyncpa [#allocation4], 1 }

</bundles_post_ra>
